<compile_context>
chip_gen: v7x
topology: tpu7x:2x2x1
jax: 0.10.0
libtpu: 0.0.40
codegen_flags: <defaults>
</compile_context>

<pallas_src>
import functools

import jax
import jax.numpy as jnp
from jax import lax
from jax.experimental import pallas as pl
from jax.experimental.pallas import tpu as pltpu


def _round_up(x, m):
    return ((x + m - 1) // m) * m


def _select_config(N, out_dtype, norm):
    """Generation-aware tile caps + VMEM request cap."""
    out_bytes = jnp.dtype(out_dtype).itemsize
    sub = {4: 8, 2: 16}.get(out_bytes, 32)          # sublane granularity of the output dtype
    try:
        kind = jax.devices()[0].device_kind.lower()
    except Exception:
        kind = ""
    if "v7" in kind:
        # 3.2 TB/s HBM -> per-step overhead matters; bigger tm, never request all 64 MiB.
        tm_cap, tn_cap, vmem_cap = 1024, 512, 48 << 20
    elif "v6" in kind:
        tm_cap, tn_cap, vmem_cap = 1024, 1024, 100 << 20
    elif "v5" in kind:
        # Hard HBM-writeback-bound: bigger tiles don't help; bf16 outputs are the lever.
        tm_cap, tn_cap, vmem_cap = 512, 512, 100 << 20
    else:
        tm_cap, tn_cap, vmem_cap = 512, 512, 64 << 20

    if norm:
        # Whole row in one lane-dense column tile so the row-sum is local; shrink tm
        # with N so the footprint stays within ~half the per-chip VMEM request cap.
        tn = _round_up(N, 128)
        bytes_per_row = tn * (4 * out_bytes + 6 * 4)   # 2 outs x 2 bufs + ~6 live f32 temps
        if sub * bytes_per_row > vmem_cap // 2:
            raise NotImplementedError(
                "norm=True with N=%d needs a two-pass row-sum on this chip "
                "(full-row tile exceeds the VMEM budget)." % N)
        tm_budget = ((vmem_cap // 2) // bytes_per_row) // sub * sub
        tm = max(sub, min(tm_cap, _round_up(N, sub), tm_budget))
    else:
        tn = min(tn_cap, _round_up(N, 128))            # lane-dense outputs
        tm = min(tm_cap, _round_up(N, sub))
    return tm, tn, out_bytes, vmem_cap


def _vmem_request_bytes(tm, tn, K, out_bytes, vmem_cap):
    """Actual tile footprint (double-buffered outputs/inputs + live f32 temporaries),
    requested with ~2x headroom, floored at the 32 MiB scoped default and capped per chip."""
    out_bufs = 2 * 2 * tm * tn * out_bytes             # 2 outputs, double-buffered
    in_bufs = 2 * 4 * (tm * K + K * tn + 2 * tn)       # f32 inputs, double-buffered
    temps = 6 * tm * tn * 4                            # materialized elementwise temporaries
    need = out_bufs + in_bufs + temps
    return int(min(max(2 * need, 32 << 20), vmem_cap))


def _fixed_complex_gaussian_kernel(a_ref, b_ref, cj_ref, adj_r_ref, adj_i_ref, *,
                                   diag, norm, n_valid):
    # a_ref : (1, tm, F+2)  rows  [x, |x|^2, 1]                 (row / i side)
    # b_ref : (1, F+2, tn)  cols  [2*s2*x; -s2; -s2*|x|^2]      (col / j side)
    # cj_ref: (1, 2, tn)    coordinate channels 1:3, lane-major (col / j side)
    a = a_ref[0]                                      # (tm, K)
    bm = b_ref[0]                                     # (K, tn)
    tm = a.shape[0]
    tn = bm.shape[1]

    # --- gaussian part: one MXU matmul gives -sigma^2 * sqdist directly ---
    logit = jnp.dot(a, bm, preferred_element_type=jnp.float32,
                    precision=lax.Precision.HIGHEST)  # 6-pass f32: avoids bf16 cancellation
    logit = jnp.minimum(logit, 0.0)                   # clamp fp error (sqdist >= 0)
    adj = jnp.exp(logit)

    if norm:
        # _stochastich: wrapper guarantees the whole (valid) row sits in this column tile.
        col0 = pl.program_id(2) * tn
        cidx = lax.broadcasted_iota(jnp.int32, (tm, tn), 1) + col0
        keep = cidx < n_valid                         # drop padded columns from the degree
        if not diag:                                  # _delete_diag only matters via the degree
            row0 = pl.program_id(1) * tm
            ridx = lax.broadcasted_iota(jnp.int32, (tm, tn), 0) + row0
            keep = keep & (ridx != cidx)
        adj = jnp.where(keep, adj, 0.0)
        deg = jnp.sum(adj, axis=-1, keepdims=True)
        adj = adj / deg
    # With norm=False the diag mask is a no-op on the outputs: diff_ii == 0 already
    # zeroes the diagonal of adj_r / adj_i, so no iota/compare/select is emitted at all.

    # --- directional (complex) part from coordinate channels 1:3 ---
    cx_i = a[:, 1:2]                                  # (tm, 1) raw coords (cols 1,2 of A)
    cy_i = a[:, 2:3]
    cj = cj_ref[0]                                    # (2, tn) lane-major, no XLU transpose
    dx = cx_i - cj[0:1, :]                            # (tm, tn): coord_i - coord_j
    dy = cy_i - cj[1:2, :]
    d2 = dx * dx + dy * dy
    inv = lax.rsqrt(d2 + (d2 == 0.0).astype(d2.dtype))   # zero-div protection; diag -> 0
    adj_inv = adj * inv                               # hoist shared product

    adj_r_ref[0] = (adj_inv * dx).astype(adj_r_ref.dtype)
    adj_i_ref[0] = (adj_inv * dy).astype(adj_i_ref.dtype)


def fixed_complex_gaussian(emb, sigma, diag=True, norm=False, out_dtype=jnp.float32):
    """emb: (B, F, N) array (PyTorch channels-first layout), F >= 3.
    Returns (adj_r, adj_i), each (B, N, N). out_dtype=jnp.bfloat16 is the fast path
    (halves the O(N^2) HBM writeback)."""
    B, F, N = emb.shape
    assert F >= 3, "need at least 3 feature channels (coords are channels 1:3)"
    emb = emb.astype(jnp.float32)
    s2 = float(sigma) ** 2

    tm, tn, out_bytes, vmem_cap = _select_config(N, out_dtype, norm)
    nc = _round_up(N, tn)
    nr = _round_up(N, tm)

    # --- wrapper-side augmentation (O(N*F) work, negligible vs. the N^2 outputs) ---
    emb_c = jnp.pad(emb, ((0, 0), (0, 0), (0, nc - N)))           # (B, F, Nc)
    emb_r = jnp.pad(emb, ((0, 0), (0, 0), (0, nr - N)))           # (B, F, Nr)

    x_r = jnp.transpose(emb_r, (0, 2, 1))                         # (B, Nr, F)
    sq_r = jnp.sum(x_r * x_r, axis=-1, keepdims=True)             # (B, Nr, 1)
    a_aug = jnp.concatenate([x_r, sq_r, jnp.ones_like(sq_r)], axis=-1)   # (B, Nr, F+2)

    sq_c = jnp.sum(emb_c * emb_c, axis=1, keepdims=True)          # (B, 1, Nc)
    b_aug = jnp.concatenate(
        [2.0 * s2 * emb_c, -s2 * jnp.ones_like(sq_c), -s2 * sq_c], axis=1)  # (B, F+2, Nc)

    coord_c = emb_c[:, 1:3, :]                                    # (B, 2, Nc)

    K = F + 2
    kernel = functools.partial(_fixed_complex_gaussian_kernel,
                               diag=bool(diag), norm=bool(norm), n_valid=N)

    out_shape = (jax.ShapeDtypeStruct((B, nr, nc), out_dtype),
                 jax.ShapeDtypeStruct((B, nr, nc), out_dtype))

    cost = pl.CostEstimate(
        flops=2 * B * nr * nc * K + 15 * B * nr * nc,
        transcendentals=2 * B * nr * nc,                          # exp + rsqrt per element
        bytes_accessed=4 * int(a_aug.size + b_aug.size + coord_c.size)
        + 2 * B * nr * nc * out_bytes,
    )

    adj_r, adj_i = pl.pallas_call(
        kernel,
        out_shape=out_shape,
        grid_spec=pltpu.PrefetchScalarGridSpec(
            num_scalar_prefetch=0,
            grid=(B, nr // tm, nc // tn),                         # j innermost: LHS revisit
            in_specs=[
                pl.BlockSpec((1, tm, K), lambda b, i, j: (b, i, 0)),
                pl.BlockSpec((1, K, tn), lambda b, i, j: (b, 0, j)),
                pl.BlockSpec((1, 2, tn), lambda b, i, j: (b, 0, j)),
            ],
            out_specs=[
                pl.BlockSpec((1, tm, tn), lambda b, i, j: (b, i, j)),
                pl.BlockSpec((1, tm, tn), lambda b, i, j: (b, i, j)),
            ],
        ),
        compiler_params=pltpu.CompilerParams(
            dimension_semantics=("parallel", "parallel", "parallel"),
            vmem_limit_bytes=_vmem_request_bytes(tm, tn, K, out_bytes, vmem_cap),
        ),
        cost_estimate=cost,
    )(a_aug, b_aug, coord_c)

    return adj_r[:, :N, :N], adj_i[:, :N, :N]


def _reference(emb, sigma, diag=True, norm=False):
    """Pure-JAX reference mirroring the PyTorch forward."""
    d_all = emb[:, :, :, None] - emb[:, :, None, :]               # (B, F, N, N)
    sq = jnp.sum(d_all ** 2, axis=1)                              # (B, N, N)
    adj = jnp.exp(-sq * sigma ** 2)
    if not diag:
        n = emb.shape[-1]
        adj = adj * (1.0 - jnp.eye(n, dtype=adj.dtype))
    if norm:
        adj = adj / jnp.sum(adj, axis=-1, keepdims=True)
    coord = emb[:, 1:3, :]
    d = coord[:, :, :, None] - coord[:, :, None, :]               # (B, 2, N, N)
    nrm = jnp.sqrt(jnp.sum(d ** 2, axis=1))                       # (B, N, N)
    nrm = nrm + (nrm == 0).astype(nrm.dtype)
    d = d / nrm[:, None]
    return adj * d[:, 0], adj * d[:, 1]


if __name__ == "__main__":
    key = jax.random.PRNGKey(0)
    B, F, N = 2, 4, 16          # batch, feature channels (>=3), nodes
    sigma = 2.0                 # deterministic "parameter" of the module
    emb = jax.random.normal(key, (B, F, N), dtype=jnp.float32)

    # float32 path: exact-semantics check across all flag combinations.
    for diag, norm in ((True, False), (False, False), (True, True), (False, True)):
        adj_r, adj_i = fixed_complex_gaussian(emb, sigma, diag=diag, norm=norm)
        jax.block_until_ready((adj_r, adj_i))
        ref_r, ref_i = _reference(emb, sigma, diag=diag, norm=norm)
        assert adj_r.shape == (B, N, N) and adj_i.shape == (B, N, N)
        assert jnp.allclose(adj_r, ref_r, atol=1e-4, rtol=1e-4), ("f32", diag, norm)
        assert jnp.allclose(adj_i, ref_i, atol=1e-4, rtol=1e-4), ("f32", diag, norm)

    # bfloat16 fast path (halves the O(N^2) writeback); looser tolerance for the cast.
    adj_r_bf, adj_i_bf = fixed_complex_gaussian(emb, sigma, out_dtype=jnp.bfloat16)
    jax.block_until_ready((adj_r_bf, adj_i_bf))
    ref_r, ref_i = _reference(emb, sigma)
    assert adj_r_bf.dtype == jnp.bfloat16 and adj_i_bf.dtype == jnp.bfloat16
    assert jnp.allclose(adj_r_bf.astype(jnp.float32), ref_r, atol=1.5e-2, rtol=1.5e-2)
    assert jnp.allclose(adj_i_bf.astype(jnp.float32), ref_i, atol=1.5e-2, rtol=1.5e-2)

    print("KERNEL_OK")
</pallas_src>

<mosaic_0001>
module attributes {stable_mosaic.version = 11 : i64} {
  func.func @_fixed_complex_gaussian_kernel(%arg0: i32, %arg1: i32, %arg2: i32, %arg3: memref<1x16x6xf32, #tpu.memory_space<vmem>>, %arg4: memref<1x6x128xf32, #tpu.memory_space<vmem>>, %arg5: memref<1x2x128xf32, #tpu.memory_space<vmem>>, %arg6: memref<1x16x128xf32, #tpu.memory_space<vmem>>, %arg7: memref<1x16x128xf32, #tpu.memory_space<vmem>>) attributes {dimension_semantics = [#tpu.dimension_semantics<parallel>, #tpu.dimension_semantics<parallel>, #tpu.dimension_semantics<parallel>], iteration_bounds = array<i64: 2, 1, 1>, scalar_prefetch = 0 : i64, scratch_operands = 0 : i64, tpu.core_type = #tpu.core_type<tc>, window_params = [{transform_indices = @transform_0, window_bounds = array<i64: 1, 16, 6>}, {transform_indices = @transform_1, window_bounds = array<i64: 1, 6, 128>}, {transform_indices = @transform_2, window_bounds = array<i64: 1, 2, 128>}, {transform_indices = @transform_3, window_bounds = array<i64: 1, 16, 128>}, {transform_indices = @transform_4, window_bounds = array<i64: 1, 16, 128>}]} {
    %c0 = arith.constant 0 : index
    %c0_0 = arith.constant 0 : index
    %c0_1 = arith.constant 0 : index
    %0 = vector.load %arg3[%c0, %c0_0, %c0_1] : memref<1x16x6xf32, #tpu.memory_space<vmem>>, vector<1x16x6xf32>
    %1 = vector.shape_cast %0 : vector<1x16x6xf32> to vector<16x6xf32>
    %c0_2 = arith.constant 0 : index
    %c0_3 = arith.constant 0 : index
    %c0_4 = arith.constant 0 : index
    %2 = vector.load %arg4[%c0_2, %c0_3, %c0_4] : memref<1x6x128xf32, #tpu.memory_space<vmem>>, vector<1x6x128xf32>
    %3 = vector.shape_cast %2 : vector<1x6x128xf32> to vector<6x128xf32>
    %cst = arith.constant dense<0.000000e+00> : vector<16x128xf32>
    %4 = tpu.matmul %1, %3, %cst {dimension_numbers = #tpu.dot_dimension_numbers<[1], [0], [0], [1], [0, 0, 1, 1], [], []>, precision = #tpu.contract_precision<fp32>} : vector<16x6xf32>, vector<6x128xf32>, vector<16x128xf32> -> vector<16x128xf32>
    %cst_5 = arith.constant 0.000000e+00 : f32
    %5 = vector.broadcast %cst_5 : f32 to vector<16x128xf32>
    %6 = arith.minimumf %4, %5 : vector<16x128xf32>
    %7 = math.exp %6 : vector<16x128xf32>
    %8 = vector.extract_strided_slice %1 {offsets = [0, 1], sizes = [16, 1], strides = [1, 1]} : vector<16x6xf32> to vector<16x1xf32>
    %9 = vector.extract_strided_slice %1 {offsets = [0, 2], sizes = [16, 1], strides = [1, 1]} : vector<16x6xf32> to vector<16x1xf32>
    %c0_6 = arith.constant 0 : index
    %c0_7 = arith.constant 0 : index
    %c0_8 = arith.constant 0 : index
    %10 = vector.load %arg5[%c0_6, %c0_7, %c0_8] : memref<1x2x128xf32, #tpu.memory_space<vmem>>, vector<1x2x128xf32>
    %11 = vector.shape_cast %10 : vector<1x2x128xf32> to vector<2x128xf32>
    %12 = vector.extract_strided_slice %11 {offsets = [0, 0], sizes = [1, 128], strides = [1, 1]} : vector<2x128xf32> to vector<1x128xf32>
    %13 = vector.broadcast %8 : vector<16x1xf32> to vector<16x128xf32>
    %14 = vector.broadcast %12 : vector<1x128xf32> to vector<16x128xf32>
    %15 = arith.subf %13, %14 : vector<16x128xf32>
    %16 = vector.extract_strided_slice %11 {offsets = [1, 0], sizes = [1, 128], strides = [1, 1]} : vector<2x128xf32> to vector<1x128xf32>
    %17 = vector.broadcast %9 : vector<16x1xf32> to vector<16x128xf32>
    %18 = vector.broadcast %16 : vector<1x128xf32> to vector<16x128xf32>
    %19 = arith.subf %17, %18 : vector<16x128xf32>
    %20 = arith.mulf %15, %15 : vector<16x128xf32>
    %21 = arith.mulf %19, %19 : vector<16x128xf32>
    %22 = arith.addf %20, %21 : vector<16x128xf32>
    %cst_9 = arith.constant 0.000000e+00 : f32
    %23 = vector.broadcast %cst_9 : f32 to vector<16x128xf32>
    %24 = arith.cmpf oeq, %22, %23 : vector<16x128xf32>
    %25 = arith.extui %24 : vector<16x128xi1> to vector<16x128xi32>
    %26 = arith.sitofp %25 : vector<16x128xi32> to vector<16x128xf32>
    %27 = arith.addf %22, %26 : vector<16x128xf32>
    %28 = math.rsqrt %27 : vector<16x128xf32>
    %29 = arith.mulf %7, %28 : vector<16x128xf32>
    %30 = arith.mulf %29, %15 : vector<16x128xf32>
    %c0_10 = arith.constant 0 : index
    %c0_11 = arith.constant 0 : index
    %c0_12 = arith.constant 0 : index
    %31 = vector.load %arg6[%c0_10, %c0_11, %c0_12] : memref<1x16x128xf32, #tpu.memory_space<vmem>>, vector<1x16x128xf32>
    %32 = vector.shape_cast %31 : vector<1x16x128xf32> to vector<16x128xf32>
    %33 = vector.shape_cast %30 : vector<16x128xf32> to vector<1x16x128xf32>
    tpu.vector_store %arg6[%c0_10, %c0_11, %c0_12], %33 {strides = array<i32>} : memref<1x16x128xf32, #tpu.memory_space<vmem>>, vector<1x16x128xf32>,
    %34 = arith.mulf %29, %19 : vector<16x128xf32>
    %c0_13 = arith.constant 0 : index
    %c0_14 = arith.constant 0 : index
    %c0_15 = arith.constant 0 : index
    %35 = vector.load %arg7[%c0_13, %c0_14, %c0_15] : memref<1x16x128xf32, #tpu.memory_space<vmem>>, vector<1x16x128xf32>
    %36 = vector.shape_cast %35 : vector<1x16x128xf32> to vector<16x128xf32>
    %37 = vector.shape_cast %34 : vector<16x128xf32> to vector<1x16x128xf32>
    tpu.vector_store %arg7[%c0_13, %c0_14, %c0_15], %37 {strides = array<i32>} : memref<1x16x128xf32, #tpu.memory_space<vmem>>, vector<1x16x128xf32>,
    return
  }
  func.func @transform_0(%arg0: i32, %arg1: i32, %arg2: i32) -> (i32, i32, i32) {
    %c0_i32 = arith.constant 0 : i32
    %c0_i32_0 = arith.constant 0 : i32
    return %arg0, %arg1, %c0_i32 : i32, i32, i32
  }
  func.func @transform_1(%arg0: i32, %arg1: i32, %arg2: i32) -> (i32, i32, i32) {
    %c0_i32 = arith.constant 0 : i32
    %c0_i32_0 = arith.constant 0 : i32
    return %arg0, %c0_i32, %arg2 : i32, i32, i32
  }
  func.func @transform_2(%arg0: i32, %arg1: i32, %arg2: i32) -> (i32, i32, i32) {
    %c0_i32 = arith.constant 0 : i32
    %c0_i32_0 = arith.constant 0 : i32
    return %arg0, %c0_i32, %arg2 : i32, i32, i32
  }
  func.func @transform_3(%arg0: i32, %arg1: i32, %arg2: i32) -> (i32, i32, i32) {
    %c0_i32 = arith.constant 0 : i32
    return %arg0, %arg1, %arg2 : i32, i32, i32
  }
  func.func @transform_4(%arg0: i32, %arg1: i32, %arg2: i32) -> (i32, i32, i32) {
    %c0_i32 = arith.constant 0 : i32
    return %arg0, %arg1, %arg2 : i32, i32, i32
  }
}

</mosaic_0001>

<bundles_post_ra>
// kernel: tpu_custom_call.1
= control target key start
LH: loop header
LB: loop body
LE: loop exit
PB: predicated region body
PF: predicated region fallthrough
CT: control target
= control target key end

     0   :  { %10 = vsyncpa [#allocation3], 0  ;;  %s1530_s0 = inlined_call_operand.vmem [shape: f32[2,16,6], index: 0, kind: input, shape index: {}]   ;;  %s1531_s1 = inlined_call_operand.vmem [shape: f32[2,6,128], index: 1, kind: input, shape index: {}]   ;;  %s1532_s2 = inlined_call_operand.vmem [shape: f32[2,2,128], index: 2, kind: input, shape index: {}]   ;;  %s1533_s3 = inlined_call_operand.hbm [shape: f32[2,16,128], index: 3, kind: output, shape index: {0}]   ;;  %s1534_s4 = inlined_call_operand.hbm [shape: f32[2,16,128], index: 4, kind: output, shape index: {1}]  }
   0x1   :  { %12 = vsyncpa [#allocation3 + $0x1], 0 }
   0x2   :  { %13 = vsyncpa [#allocation5], 0 }
   0x3   :  { %15 = vsyncpa [#allocation5 + $0x1], 0  ;;  %s1364_s15 = smov 0   ;;  %s1366_s16 = smov 0  }
   0x4   :  { %s1368_s17 = smov 0   ;;  %s1370_s18 = smov 0  }
   0x5   :  { %s1372_s19 = smov 0   ;;  %s1374_s20 = smov 0  }
   0x6 LB: > { %s1062_s21 = sadd.s32 4294967295, %s1330_s20   ;;  %s1063_s22 = sadd.s32 4294967294, %s1330_s20   ;;  %s1330_s20 = sphi %s1374_s20, %s21_s20   ;;  %s1326_s19 = sphi %s1372_s19, %s1541_s19   ;;  %s1322_s18 = sphi %s1370_s18, %s1540_s18   ;;  %s1318_s17 = sphi %s1368_s17, %s1539_s17   ;;  %s1314_s16 = sphi %s1366_s16, %s1538_s16   ;;  %s1310_s15 = sphi %s1364_s15, %s1537_s15  }
   0x7   : > { %s40_s23 = sadd.s32 1, %s1326_s19  ;;  %s135_s24 = sadd.s32 1, %s1318_s17 }
   0x8   : > { %p42_p0 = scmp.ge.s32.totalorder %s40_s23, 2  ;;  %p145_p1 = scmp.ne.s32.totalorder %s1318_s17, %s1314_s16 }
   0x9   : > { %p146_p2 = scmp.eq.s32.totalorder %s1062_s21, 1  ;;  %p151_p3 = scmp.ne.s32.totalorder %s1314_s16, %s1310_s15 }
   0xa   : > { %s1543_s23 = smov (%p42_p0, %s40_s23), 0  ;;  %p152_p5 = scmp.eq.s32.totalorder %s1063_s22, 1 }
   0xb   : > { %p1404_p4 = por %p146_p2, %p145_p1  ;;  %s128_s26 = ssub.s32 %s1326_s19, %s1543_s23 }
   0xc   : > { %p1066_p6 = scmp.ge.s32.totalorder %s1330_s20, 1  ;;  %p133_p7 = scmp.eq.s32.totalorder %s128_s26, 0 }
   0xd   : > { %p1411_p8 = por %p152_p5, %p151_p3  ;;  %p233_p9 = scmp.lt.s32.totalorder %s1330_s20, 3 }
   0xe   : > { %s1417_s28 = scalar_select %p133_p7, %s1318_s17, %s135_s24  }
   0xf   : > { %p234_p10 = pnand %p1066_p6, %p233_p9 }
  0x10   : > { %p283_p11 = scmp.lt.s32.totalorder (!%p234_p10), %s1322_s18, 1  ;;  %v1332_v0 = vmov (!%p234_p10), 2   ;;  %v1333_v1 = vmov (!%p234_p10), 1   ;;  %vm318_vm0 = vcmask (!%p234_p10), 1045504   ;;  %vm311_vm1 = vcmask (!%p234_p10), 48128   ;;  %s1436_s22 = sand.u32 (!%p234_p10), 1, %s1314_s16  }
  0x11   : > { %237 = sbr.rel (%p234_p10) target bundleno = 330 (0x14a), region = 32  ;;  %1210 = vset.pattern.permute.xlu1 (!%p234_p10), %v1332_v0  ;;  %1209 = vset.pattern.permute.xlu0 (!%p234_p10), %v1333_v1  ;;  %v826_v23 = vlaneseq (!%p234_p10)  ;;  %v1334_v46 = vmov (!%p234_p10), 0.0   ;;  %s1067_s24 = sshll.u32 (!%p234_p10), %s1436_s22, 4 }
  0x12   : > { %s1084_s26 = sshll.u32 (!%p234_p10), %s1322_s18, 8  ;;  %s1335_s14 = smov (!%p234_p10), [#allocation2]  }
  0x13   : > { %v827_v24 = vshrl.u32 (!%p234_p10), %v826_v23, 7  ;;  %s1443_s7 = scalar_lea.hbm (!%p234_p10), %s1533_s3, %s1084_s26 }
  0x15   : > { %v842_v25 = vsub.s32 (!%p234_p10), 1, %v827_v24  ;;  %v828_v27 = vsub.s32 (!%p234_p10), 0, %v827_v24 }
  0x18   : > { %s1421_s29 = scalar_select %p283_p11, %s1322_s18, 1 }
  0x1a   : > { %s1071_s30 = sshll.u32 %s1421_s29, 3  ;;  %s1083_s5 = sshll.u32 %s1421_s29, 4 }
  0x1b   : > { %s298_s8 = scalar_lea.vmem %s1531_s1, %s1071_s30  ;;  %s290_s11 = scalar_lea.vmem %s1530_s0, %s1083_s5 }
  0x1c   : > { %v310_v2 = vld [vmem:[%s298_s8] sm:$0x3f]  ;;  %v309_v4 = vld [vmem:[%s290_s11 + $0x8] sm:$0xff]  ;;  %s1072_s12 = sshll.u32 %s1421_s29, 1  ;;  %s274_s29 = scalar_lea.vmem [#allocation2], %s1067_s24 }
  0x1d   : > { %v308_v3 = vld [vmem:[%s290_s11] sm:$0xff]  ;;  %v320_v5 = vsel %vm318_vm0, %v310_v2, 0  ;;  %v316_v7 = vsel %vm311_vm1, %v309_v4, 0  ;;  %s305_s21 = scalar_lea.vmem %s1532_s2, %s1072_s12  ;;  %s894_s30 = sshll.u32 %s274_s29, 4  ;;  %s1445_s30 = int_to_ptr.vmem [resolvable:$true] %s894_s30 }
  0x1e   : > { %v313_v6 = vsel %vm311_vm1, %v308_v3, 0  ;;  %833 = vperm.xlu1 %1210, %v308_v3   ;;  %819 = vperm.xlu0 %1209, %v308_v3   ;;  %v323_v8 = vand.u32 4294901760, %v320_v5  ;;  %v398_v10 = vand.u32 4294901760, %v316_v7  ;;  %v817_v29 = vld [vmem:[%s305_s21] sm:$0x3]  ;;  %s281_s8 = scalar_lea.vmem [#allocation4], %s1067_s24  ;;  %s1450_s11 = scalar_lea.hbm %s1534_s4, %s1084_s26 }
  0x1f   : > { %v388_v9 = vand.u32 4294901760, %v313_v6  ;;  %v843_v30 = vrot.slane %v817_v29, %v842_v25  ;;  %v829_v31 = vrot.slane %v817_v29, %v828_v27  ;;  %s913_s9 = sshll.u32 %s281_s8, 4  ;;  %s873_s12 = scalar_lea.sflag [#allocation3], %s1436_s22  ;;  %s1452_s9 = int_to_ptr.vmem [resolvable:$true] %s913_s9 }
  0x20   : > { %1119 = vmatprep.subr.mxu0 %v323_v8  ;;  %v399_v12 = vsub.f32 %v316_v7, %v398_v10  ;;  %1104 = vmatprep.subr.mxu1 %v323_v8  ;;  %v410_v13 = vsub.f32 %v320_v5, %v323_v8  ;;  %s1220_s13 = scalar_lea.vmem %s1445_s30, 256  ;;  %s1224_s21 = sshll.u32 %s1335_s14, 4  ;;  %s1225_s21 = int_to_ptr.vmem [resolvable:$false] %s1224_s21 }
  0x21   : > { %v389_v11 = vsub.f32 %v313_v6, %v388_v9  ;;  %1120 = vmatpush3.msra.mxu0 %v323_v8  ;;  %1105 = vmatpush3.msra.mxu1 %v323_v8  ;;  %p1221_p12 = scmp.ne.s32.totalorder %s1445_s30, %s1220_s13  ;;  %s1226_s24 = scalar_lea.vmem %s1225_s21, 512 }
  0x22   : > { %v400_v15 = vand.u32 4294901760, %v399_v12  ;;  %v411_v16 = vand.u32 4294901760, %v410_v13  ;;  %837 = vperm.xlu1 %1210, %v309_v4   ;;  %823 = vperm.xlu0 %1209, %v309_v4   ;;  %p1227_p1 = scmp.lt.s32.totalorder %s1445_s30, %s1225_s21  ;;  %p1228_p2 = scmp.lt.s32.totalorder %s1226_s24, %s1220_s13 }
  0x23   : > { %v390_v14 = vand.u32 4294901760, %v389_v11  ;;  %p1222_p13 = pnand %p1221_p12, %p1404_p4 }
  0x24   : > { %v412_v18 = vsub.f32 %v410_v13, %v411_v16  ;;  %1124 = vmatprep.subr.mxu0 %v411_v16  ;;  %v401_v19 = vsub.f32 %v399_v12, %v400_v15  ;;  %p1229_p3 = por %p1228_p2, %p1227_p1 }
  0x25   : > { %1121 = vmatprep.mubr.f32.mxu0 %v390_v14  ;;  %v391_v17 = vsub.f32 %v389_v11, %v390_v14  ;;  %p1223_p0 = pneg %p1222_p13 }
  0x26   : > { %1122 = vmatmul.mubr.f32.vlgmr.msra.gmra.mrb[0].mxu0 %v400_v15  ;;  %v413_v21 = vand.u32 4294901760, %v412_v18  ;;  %v402_v22 = vand.u32 4294901760, %v401_v19  ;;  %1211 = vset.pattern.permute.xlu0 %v1332_v0 }
  0x27   : > { %v392_v20 = vand.u32 4294901760, %v391_v17  ;;  %1125 = vmatpush3.msra.mxu0 %v411_v16  ;;  %1126 = vmatprep.mubr.f32.mxu0 %v388_v9  ;;  %p1230_p5 = pnand %p1229_p3, %p1223_p0 }
  0x28   : > { %1129 = vmatprep.subr.mxu0 %v323_v8  ;;  %1109 = vmatprep.subr.mxu1 %v413_v21 }
  0x29   : > { %1106 = vmatprep.mubr.f32.mxu1 %v392_v20 }
  0x2a   : > { %1107 = vmatmul.mubr.f32.vlgmr.msra.gmra.mrb[0].mxu1 %v402_v22 }
  0x2b   : > { %1110 = vmatpush3.msra.mxu1 %v413_v21  ;;  %1111 = vmatprep.mubr.f32.mxu1 %v388_v9 }
  0x2c   : > { %1114 = vmatprep.subr.mxu1 %v410_v13 }
  0x2e   : > { %1127 = vmatmul.mubr.f32.vlgmr.msra.gmra.mrb[0].mxu0 %v398_v10 }
  0x2f   : > { %1130 = vmatpush3.msra.mxu0 %v323_v8  ;;  %1131 = vmatprep.mubr.f32.mxu0 %v388_v9 }
  0x32   : > { %1112 = vmatmul.mubr.f32.vlgmr.msra.gmra.mrb[0].mxu1 %v398_v10 }
  0x33   : > { %1115 = vmatpush3.msra.mxu1 %v410_v13  ;;  %1116 = vmatprep.mubr.f32.mxu1 %v389_v11 }
  0x36   : > { %1132 = vmatmul.mubr.f32.vlgmr.msra.gmra.mrb[0].mxu0 %v398_v10 }
  0x3a   : > { %1117 = vmatmul.mubr.f32.vlgmr.msra.gmra.mrb[0].mxu1 %v399_v12 }
  0x9d   : > { %v834_v26 = vpop.permute.xlu1 %833  ;;  %v820_v28 = vpop.permute.xlu0 %819 }
  0x9e   : > { %v844_v34 = vsub.f32 %v834_v26, %v843_v30  ;;  %v830_v35 = vsub.f32 %v820_v28, %v829_v31 }
  0xa0   : > { %v848_v38 = vmul.f32 %v844_v34, %v844_v34  ;;  %v846_v39 = vmul.f32 %v830_v35, %v830_v35 }
  0xa1   : > { %v838_v32 = vpop.permute.xlu1 %837  ;;  %v824_v33 = vpop.permute.xlu0 %823 }
  0xa2   : > { %v845_v36 = vsub.f32 %v838_v32, %v843_v30  ;;  %v831_v37 = vsub.f32 %v824_v33, %v829_v31  ;;  %v850_v42 = vadd.f32 %v848_v38, %v846_v39 }
  0xa4   : > { %v849_v40 = vmul.f32 %v845_v36, %v845_v36  ;;  %v847_v41 = vmul.f32 %v831_v37, %v831_v37  ;;  %vm852_vm2 = vcmp.eq.f32.partialorder %v850_v42, 0.0 }
  0xa5   : > { %v1073_v47 = vsel %vm852_vm2, 1.0, %v1334_v46 }
  0xa6   : > { %v851_v43 = vadd.f32 %v849_v40, %v847_v41  ;;  %v858_v50 = vadd.f32 %v1073_v47, %v850_v42 }
  0xa8   : > { %vm853_vm3 = vcmp.eq.f32.partialorder %v851_v43, 0.0  ;;  %1212 = vrsqrt.f32 %v858_v50 }
  0xa9   : > { %v1074_v48 = vsel %vm853_vm3, 1.0, %v1334_v46 }
  0xaa   : > { %v859_v53 = vadd.f32 %v1074_v48, %v851_v43 }
  0xac   : > { %1214 = vrsqrt.f32 %v859_v53 }
  0xb2   : > { %v1213_v59 = vpop.eup %1212 }
  0xb6   : > { %v1215_v60 = vpop.eup %1214 }
 0x109   : > { %v1133_v44 = vpop.f32.mrb[0].mxu0 }
 0x10a   : > { %v801_v45 = vpop.f32.mrb[1].mxu0 }
 0x10d   : > { %v1118_v49 = vpop.f32.mrb[0].mxu1 }
 0x10e   : > { %v1134_v51 = vadd.f32 %v1133_v44, %v1118_v49  ;;  %v560_v52 = vpop.f32.mrb[1].mxu1 }
 0x10f   : > { %v1135_v54 = vadd.f32 %v801_v45, %v560_v52 }
 0x110   : > { %v812_v55 = vmin.f32 %v1134_v51, 0.0 }
 0x111   : > { %v811_v56 = vmin.f32 %v1135_v54, 0.0 }
 0x112   : > { %v815_v57 = vmul.f32 1.442695, %v812_v55 }
 0x113   : > { %v813_v58 = vmul.f32 1.442695, %v811_v56 }
 0x114   : > { %1216 = vpow2.f32 %v815_v57 }
 0x115   : > { %1218 = vpow2.f32 %v813_v58 }
 0x11e   : > { %v1217_v61 = vpop.eup %1216 }
 0x11f   : > { %v1219_v62 = vpop.eup %1218  ;;  %v863_v63 = vmul.f32 %v1217_v61, %v1215_v60 }
 0x120   : > { %v862_v0 = vmul.f32 %v1219_v62, %v1213_v59 }
 0x121   : > { %v865_v1 = vmul.f32 %v863_v63, %v831_v37  ;;  %v869_v2 = vmul.f32 %v863_v63, %v845_v36 }
 0x122   : > { %v864_v3 = vmul.f32 %v862_v0, %v830_v35  ;;  %v868_v4 = vmul.f32 %v862_v0, %v844_v34 }
 0x123   : > { %867 = vst [vmem:[%s274_s29 + $0x8] sm:$0xff] %v865_v1  ;;  %871 = vst [vmem:[%s281_s8 + $0x8] sm:$0xff] %v869_v2 }
 0x124   : > { %866 = vst [vmem:[%s274_s29] sm:$0xff] %v864_v3  ;;  %870 = vst [vmem:[%s281_s8] sm:$0xff] %v868_v4 }
 0x125   : > { %1233 = shalt.err (!%p1230_p5)
}
 0x126   : > { %s1234_s26 = scalar_lea.hbm %s1443_s7, 256  ;;  %s1238_s6 = scalar_lea.hbm %s1533_s3, 512 }
 0x127   : > { %p1235_p6 = scmp.ne.s32.totalorder %s1443_s7, %s1234_s26  ;;  %p1239_p10 = scmp.lt.u32.totalorder %s1443_s7, %s1533_s3 }
 0x128   : > { %p1240_p11 = scmp.lt.u32.totalorder %s1238_s6, %s1234_s26  ;;  %p1242_p13 = scmp.lt.u32.totalorder %s1234_s26, %s1443_s7 }
 0x129   : > { %p1236_p7 = pnand %p1235_p6, %p1404_p4 }
 0x12a   : > { %p1241_p12 = por %p1240_p11, %p1239_p10 }
 0x12b   : > { %p1237_p9 = pneg %p1236_p7 }
 0x12c   : > { %p1243_p0 = por %p1242_p13, %p1241_p12 }
 0x12e   : > { %p1244_p1 = pnand %p1243_p0, %p1237_p9 }
 0x130   : > { %1247 = shalt.err (!%p1244_p1)
}
 0x131   : > { %s1336_s10 = smov 128   ;;  %s1337_s13 = smov 8  }
 0x132   : > { %1144 = dma.vmem_to_hbm [thread:$0]  (%p1404_p4), %s1445_s30, 256, %s1443_s7, %s873_s12, %s1336_s10, %s1336_s10, %s1337_s13  }
 0x133   : > { %s878_s14 = scalar_lea.sflag [#allocation5], %s1436_s22  ;;  %s1248_s21 = scalar_lea.vmem %s1452_s9, 256 }
 0x134   : > { %p1249_p2 = scmp.ne.s32.totalorder %s1452_s9, %s1248_s21  ;;  %s1338_s24 = smov [#allocation4]  }
 0x135   : > { %s1252_s26 = sshll.u32 %s1338_s24, 4  ;;  %s1253_s26 = int_to_ptr.vmem [resolvable:$false] %s1252_s26 }
 0x136   : > { %p1250_p3 = pnand %p1249_p2, %p1404_p4  ;;  %s1254_s29 = scalar_lea.vmem %s1253_s26, 512 }
 0x137   : > { %p1255_p6 = scmp.lt.s32.totalorder %s1452_s9, %s1253_s26  ;;  %p1256_p7 = scmp.lt.s32.totalorder %s1254_s29, %s1248_s21 }
 0x138   : > { %p1251_p5 = pneg %p1250_p3 }
 0x139   : > { %p1257_p9 = por %p1256_p7, %p1255_p6 }
 0x13b   : > { %p1258_p10 = pnand %p1257_p9, %p1251_p5 }
 0x13d   : > { %1261 = shalt.err (!%p1258_p10)
}
 0x13e   : > { %s1262_s30 = scalar_lea.hbm %s1450_s11, 256  ;;  %s1266_s5 = scalar_lea.hbm %s1534_s4, 512 }
 0x13f   : > { %p1263_p11 = scmp.ne.s32.totalorder %s1450_s11, %s1262_s30  ;;  %p1267_p0 = scmp.lt.u32.totalorder %s1450_s11, %s1534_s4 }
 0x140   : > { %p1268_p1 = scmp.lt.u32.totalorder %s1266_s5, %s1262_s30  ;;  %p1270_p3 = scmp.lt.u32.totalorder %s1262_s30, %s1450_s11 }
 0x141   : > { %p1264_p12 = pnand %p1263_p11, %p1404_p4 }
 0x142   : > { %p1269_p2 = por %p1268_p1, %p1267_p0 }
 0x143   : > { %p1265_p13 = pneg %p1264_p12 }
 0x144   : > { %p1271_p5 = por %p1270_p3, %p1269_p2 }
 0x146   : > { %p1272_p6 = pnand %p1271_p5, %p1265_p13 }
 0x148   : > { %1275 = shalt.err (!%p1272_p6)
}
 0x149   : > { %1145 = dma.vmem_to_hbm [thread:$0]  (%p1404_p4), %s1452_s9, 256, %s1450_s11, %s878_s14, %s1336_s10, %s1336_s10, %s1337_s13  }
 0x14a PF: > { %p1155_p7 = scmp.ge.s32.totalorder %s1330_s20, 2  ;;  %s928_s18 = sand.u32 1, %s1310_s15  }
 0x14b   : > { %s929_s21 = scalar_lea.sflag [#allocation3], %s928_s18 }
 0x14c   : > { %p1149_p9 = pnand %p1155_p7, %p1411_p8 }
 0x14e   : > { %1301 = dma.done.wait (!%p1149_p9), %s929_s21, 256  }
 0x14f   : > { %1303 = vsyncadd (!%p1149_p9), %s929_s21, 4294967040  ;;  %s938_s25 = scalar_lea.sflag [#allocation5], %s928_s18 }
 0x150   : > { %1305 = dma.done.wait (!%p1149_p9), %s938_s25, 256  }
 0x151   : > { %1307 = vsyncadd (!%p1149_p9), %s938_s25, 4294967040  ;;  %s21_s20 = sadd.s32 1, %s1330_s20   ;;  %s1537_s15 = smov %s1314_s16 }
 0x152   : > { %p18_p10 = scmp.ge.s32.totalorder %s21_s20, 4   ;;  %s1538_s16 = smov %s1318_s17 }
 0x153   : > { %s1539_s17 = smov %s1417_s28  ;;  %s1540_s18 = smov %s1326_s19 }
 0x154   : > { %s1541_s19 = smov %s1543_s23  ;;  %20 = sbr.rel (!%p18_p10) target bundleno = 6 (0x6), region = 90 }
 0x15b   :  { %943 = vsyncpa [#allocation3], 1 }
 0x15c   :  { %945 = vsyncpa [#allocation3 + $0x1], 1 }
 0x15d   :  { %946 = vsyncpa [#allocation5], 1 }
 0x15e   :  { %948 = vsyncpa [#allocation5 + $0x1], 1 }

</bundles_post_ra>
